<compile_context>
chip_gen: v7x
topology: tpu7x:2x2x1
jax: 0.10.0
libtpu: 0.0.40
codegen_flags: <defaults>
</compile_context>

<pallas_src>
import functools

import jax
import jax.numpy as jnp
from jax import lax
from jax.experimental import pallas as pl
from jax.experimental.pallas import tpu as pltpu


def _round_up(x, m):
    return (x + m - 1) // m * m


def _pick_tile(dim, candidates):
    """Largest candidate tile that divides `dim`, else the full dimension (always a legal block)."""
    for c in candidates:
        if dim % c == 0:
            return c
    return dim


@functools.lru_cache(maxsize=None)
def _vmem_limit_bytes():
    """Chip-aware scoped-VMEM budget (v7x only has 64 MiB total; leave headroom for scratch)."""
    try:
        cap = pltpu.get_tpu_info().vmem_capacity_bytes
    except Exception:
        cap = 64 * 1024 * 1024
    return int(min(cap * 3 // 4, 64 * 1024 * 1024))


# -----------------------------------------------------------------------------
# Tiled linear projection: o = x @ w + b   (optionally with fused elu(x)+1 epilogue)
# -----------------------------------------------------------------------------
def _linear_kernel(x_ref, w_ref, b_ref, o_ref, acc_ref, *, feature_map, mxu_dtype):
    @pl.when(pl.program_id(2) == 0)
    def _():
        acc_ref[...] = jnp.zeros_like(acc_ref)

    acc_ref[...] += jnp.dot(x_ref[...].astype(mxu_dtype),
                            w_ref[...].astype(mxu_dtype),
                            preferred_element_type=jnp.float32)

    @pl.when(pl.program_id(2) == pl.num_programs(2) - 1)
    def _():
        y = acc_ref[...] + b_ref[...].astype(jnp.float32)
        if feature_map:
            # elu(y) + 1, fused on the tile while it is already resident in VMEM.
            y = jnp.where(y > 0, y + 1.0, jnp.exp(y))
        o_ref[...] = y.astype(o_ref.dtype)


def _linear(x, w, b, *, feature_map=False, mxu_dtype=jnp.bfloat16):
    m, kdim = x.shape
    _, n = w.shape
    tm = _pick_tile(m, (256, 128, 64, 32, 16, 8))
    tn = _pick_tile(n, (256, 128))
    tk = _pick_tile(kdim, (256, 128))          # 256-granular K tiles (v5e-friendly, fine on v6e/v7x)
    grid = (m // tm, n // tn, kdim // tk)
    kernel = functools.partial(_linear_kernel, feature_map=feature_map, mxu_dtype=mxu_dtype)
    return pl.pallas_call(
        kernel,
        out_shape=jax.ShapeDtypeStruct((m, n), x.dtype),
        grid_spec=pltpu.PrefetchScalarGridSpec(
            num_scalar_prefetch=0,
            grid=grid,
            in_specs=[
                pl.BlockSpec((tm, tk), lambda i, j, k: (i, k)),
                pl.BlockSpec((tk, tn), lambda i, j, k: (k, j)),
                pl.BlockSpec((1, tn), lambda i, j, k: (0, j)),
            ],
            out_specs=pl.BlockSpec((tm, tn), lambda i, j, k: (i, j)),
            scratch_shapes=[pltpu.VMEM((tm, tn), jnp.float32)],
        ),
        compiler_params=pltpu.CompilerParams(
            dimension_semantics=("parallel", "parallel", "arbitrary"),
            vmem_limit_bytes=_vmem_limit_bytes(),
        ),
    )(x, w, b.reshape(1, n))


# -----------------------------------------------------------------------------
# Chunked causal linear attention (per-grid-step: one batch, one head group, one chunk)
# -----------------------------------------------------------------------------
def _attn_kernel(q_ref, k_ref, v_ref, o_ref, kv_ref, ksum_ref, *,
                 heads, head_dim, eps, mxu_dtype):
    # q/k are already feature-mapped (elu+1) and q is already scaled via W_q.
    # Reset the carried recurrence state at the start of every sequence (chunk index 0).
    @pl.when(pl.program_id(2) == 0)
    def _():
        kv_ref[...] = jnp.zeros_like(kv_ref)
        ksum_ref[...] = jnp.zeros_like(ksum_ref)

    qf = q_ref[0].astype(jnp.float32)          # (C, Wg)
    kf = k_ref[0].astype(jnp.float32)          # (C, Wg)
    vv = v_ref[0].astype(jnp.float32)          # (C, Wg)

    c = qf.shape[0]
    row = lax.broadcasted_iota(jnp.int32, (c, c), 0)
    col = lax.broadcasted_iota(jnp.int32, (c, c), 1)
    causal = col <= row                        # built once per chunk, reused for every head

    for h in range(heads):                     # short static unroll (heads per group, typically 1-4)
        sl = slice(h * head_dim, (h + 1) * head_dim)
        qh, kh, vh = qf[:, sl], kf[:, sl], vv[:, sl]          # (C, E)

        # --- intra-chunk (causally masked): MXU, bf16 inputs / f32 accumulation ---
        s = lax.dot_general(qh.astype(mxu_dtype), kh.astype(mxu_dtype),
                            (((1,), (1,)), ((), ())),          # Qh @ Kh^T, no transpose
                            preferred_element_type=jnp.float32)           # (C, C)
        s = jnp.where(causal, s, 0.0)
        num = jnp.dot(s.astype(mxu_dtype), vh.astype(mxu_dtype),
                      preferred_element_type=jnp.float32)                 # (C, E)
        den = jnp.sum(s, axis=-1, keepdims=True)                          # (C, 1)

        # --- inter-chunk contribution from the carried state (kept f32: state grows with L) ---
        st = kv_ref[h]                                                    # (E, E) running K^T V
        ks = ksum_ref[h]                                                  # (1, E) running sum K
        num = num + jnp.dot(qh, st, preferred_element_type=jnp.float32)
        den = den + jnp.sum(qh * ks, axis=-1, keepdims=True)

        # Per-head direct store bounds live ranges (no concat of all heads -> no spills).
        o_ref[0, :, sl] = (num * pl.reciprocal(den + eps, approx=True)).astype(o_ref.dtype)

        # --- state update for the next chunk: Kh^T @ Vh (contract the chunk dim) ---
        kv_ref[h] = st + lax.dot_general(kh.astype(mxu_dtype), vh.astype(mxu_dtype),
                                         (((0,), (0,)), ((), ())),
                                         preferred_element_type=jnp.float32)
        ksum_ref[h] = ks + jnp.sum(kh, axis=0, keepdims=True)


def _pick_chunk(seq_len, head_dim):
    """C ~ 2-4x head_dim, clamped to [128, 256]; single sublane-aligned chunk for short sequences."""
    target = 256 if head_dim >= 64 else 128
    if seq_len <= target:
        return _round_up(seq_len, 8)
    return target


def _pick_head_groups(n_head, head_dim):
    """Split heads into groups whose lane width is a multiple of 128 (or the full model dim),
    preferring ~256-wide groups: keeps a 'parallel' axis for v7x's two TensorCores while staying
    wide enough to amortize per-grid-step overhead."""
    best = None
    for hpg in range(1, n_head + 1):
        if n_head % hpg:
            continue
        width = hpg * head_dim
        if width % 128 != 0 and hpg != n_head:
            continue
        score = abs(width - 256)
        if best is None or score < best[0]:
            best = (score, hpg)
    return n_head // best[1]


def _causal_linear_attention(q, k, v, *, n_head, head_dim, eps, mxu_dtype=jnp.bfloat16):
    """q/k already feature-mapped (elu+1) and q pre-scaled; all [B, L, D] -> out [B, L, D]."""
    b, seq_len, d = q.shape
    chunk = _pick_chunk(seq_len, head_dim)
    l_pad = _round_up(seq_len, chunk)
    if l_pad != seq_len:
        # Tail zero-padding is causally inert: padded keys only appear at s > every real l,
        # and padded query rows are sliced off below.
        pad = ((0, 0), (0, l_pad - seq_len), (0, 0))
        q, k, v = jnp.pad(q, pad), jnp.pad(k, pad), jnp.pad(v, pad)
    n_chunks = l_pad // chunk

    n_groups = _pick_head_groups(n_head, head_dim)
    hpg = n_head // n_groups                 # heads per group
    gw = hpg * head_dim                      # group lane width (multiple of 128, or == D)

    spec = pl.BlockSpec((1, chunk, gw), lambda bi, gi, ci: (bi, ci, gi))
    kernel = functools.partial(_attn_kernel, heads=hpg, head_dim=head_dim,
                               eps=eps, mxu_dtype=mxu_dtype)
    out = pl.pallas_call(
        kernel,
        out_shape=jax.ShapeDtypeStruct((b, l_pad, d), q.dtype),
        grid_spec=pltpu.PrefetchScalarGridSpec(
            num_scalar_prefetch=0,
            grid=(b, n_groups, n_chunks),     # chunk axis last: carries the recurrence state
            in_specs=[spec, spec, spec],
            out_specs=spec,
            scratch_shapes=[
                pltpu.VMEM((hpg, head_dim, head_dim), jnp.float32),  # running K^T V per head
                pltpu.VMEM((hpg, 1, head_dim), jnp.float32),         # running sum K per head
            ],
        ),
        compiler_params=pltpu.CompilerParams(
            dimension_semantics=("parallel", "parallel", "arbitrary"),
            vmem_limit_bytes=_vmem_limit_bytes(),
        ),
    )(q, k, v)
    if l_pad != seq_len:
        out = out[:, :seq_len, :]
    return out


# -----------------------------------------------------------------------------
# Module wrapper
# -----------------------------------------------------------------------------
def init_params(key, d_model):
    """PyTorch-nn.Linear-style uniform(-1/sqrt(fan_in), 1/sqrt(fan_in)) init."""
    bound = 1.0 / (d_model ** 0.5)
    keys = jax.random.split(key, 8)
    names = ["q", "k", "v", "o"]
    params = {}
    for i, n in enumerate(names):
        # weights stored as [d_in, d_out] (transposed vs torch's [out, in])
        params[f"w{n}"] = jax.random.uniform(
            keys[2 * i], (d_model, d_model), jnp.float32, -bound, bound)
        params[f"b{n}"] = jax.random.uniform(
            keys[2 * i + 1], (d_model,), jnp.float32, -bound, bound)
    return params


def causal_linear_attention_layer(params, querys, keys, values, *,
                                  n_head, eps=1e-6, mxu_dtype=jnp.bfloat16):
    B, Lq, D = querys.shape
    assert keys.shape == values.shape
    _, Lk, _ = keys.shape
    assert Lq == Lk, "causal linear attention requires matching query/key lengths"
    head_dim = D // n_head
    scaling = head_dim ** -0.5

    # Fold the query scaling into W_q / b_q (q is scaled *before* the feature map in the reference,
    # so (x @ Wq + bq) * s == x @ (Wq*s) + bq*s), and fuse the elu(x)+1 feature map into the q/k
    # projection epilogues (tile already in VMEM -> zero extra HBM traffic).
    qf = _linear(querys.reshape(B * Lq, D), params["wq"] * scaling, params["bq"] * scaling,
                 feature_map=True, mxu_dtype=mxu_dtype)
    kf = _linear(keys.reshape(B * Lk, D), params["wk"], params["bk"],
                 feature_map=True, mxu_dtype=mxu_dtype)
    v = _linear(values.reshape(B * Lk, D), params["wv"], params["bv"], mxu_dtype=mxu_dtype)

    # Attention consumes the [B, L, D] layout directly; heads are split inside the kernel
    # (no transposes / head reshapes in HBM).
    out = _causal_linear_attention(
        qf.reshape(B, Lq, D), kf.reshape(B, Lk, D), v.reshape(B, Lk, D),
        n_head=n_head, head_dim=head_dim, eps=eps, mxu_dtype=mxu_dtype)

    out = _linear(out.reshape(B * Lq, D), params["wo"], params["bo"], mxu_dtype=mxu_dtype)
    return out.reshape(B, Lq, D)


if __name__ == "__main__":
    B, L, d_model, n_head = 2, 8, 32, 4   # head_dim = 8

    key = jax.random.PRNGKey(0)
    kp, kq, kk, kv = jax.random.split(key, 4)

    params = init_params(kp, d_model)
    querys = jax.random.normal(kq, (B, L, d_model), jnp.float32)
    keys_in = jax.random.normal(kk, (B, L, d_model), jnp.float32)
    values = jax.random.normal(kv, (B, L, d_model), jnp.float32)

    out = causal_linear_attention_layer(
        params, querys, keys_in, values, n_head=n_head, eps=1e-6)
    jax.block_until_ready(out)
    assert out.shape == (B, L, d_model)
    print("KERNEL_OK")
</pallas_src>

<mosaic_0001>
module attributes {stable_mosaic.version = 11 : i64} {
  func.func @_linear_kernel(%arg0: i32, %arg1: i32, %arg2: i32, %arg3: memref<16x32xf32, #tpu.memory_space<vmem>>, %arg4: memref<32x32xf32, #tpu.memory_space<vmem>>, %arg5: memref<1x32xf32, #tpu.memory_space<vmem>>, %arg6: memref<16x32xf32, #tpu.memory_space<vmem>>, %arg7: memref<16x32xf32, #tpu.memory_space<vmem>>) attributes {dimension_semantics = [#tpu.dimension_semantics<parallel>, #tpu.dimension_semantics<parallel>, #tpu.dimension_semantics<arbitrary>], iteration_bounds = array<i64: 1, 1, 1>, scalar_prefetch = 0 : i64, scratch_operands = 1 : i64, tpu.core_type = #tpu.core_type<tc>, window_params = [{transform_indices = @transform_0, window_bounds = array<i64: 16, 32>}, {transform_indices = @transform_1, window_bounds = array<i64: 32, 32>}, {transform_indices = @transform_2, window_bounds = array<i64: 1, 32>}, {transform_indices = @transform_3, window_bounds = array<i64: 16, 32>}]} {
    %c0_i32 = arith.constant 0 : i32
    %0 = arith.cmpi eq, %arg2, %c0_i32 : i32
    %1 = arith.extui %0 : i1 to i32
    %c0_i32_0 = arith.constant 0 : i32
    %2 = arith.cmpi ne, %1, %c0_i32_0 : i32
    scf.if %2 {
      %cst_10 = arith.constant 0.000000e+00 : f32
      %14 = vector.broadcast %cst_10 : f32 to vector<16x32xf32>
      %c0_11 = arith.constant 0 : index
      %c0_12 = arith.constant 0 : index
      %15 = vector.load %arg7[%c0_11, %c0_12] : memref<16x32xf32, #tpu.memory_space<vmem>>, vector<16x32xf32>
      tpu.vector_store %arg7[%c0_11, %c0_12], %14 {strides = array<i32>} : memref<16x32xf32, #tpu.memory_space<vmem>>, vector<16x32xf32>,
    } else {
    }
    %c0 = arith.constant 0 : index
    %c0_1 = arith.constant 0 : index
    %3 = vector.load %arg7[%c0, %c0_1] : memref<16x32xf32, #tpu.memory_space<vmem>>, vector<16x32xf32>
    %c0_2 = arith.constant 0 : index
    %c0_3 = arith.constant 0 : index
    %4 = vector.load %arg3[%c0_2, %c0_3] : memref<16x32xf32, #tpu.memory_space<vmem>>, vector<16x32xf32>
    %5 = arith.truncf %4 : vector<16x32xf32> to vector<16x32xbf16>
    %c0_4 = arith.constant 0 : index
    %c0_5 = arith.constant 0 : index
    %6 = vector.load %arg4[%c0_4, %c0_5] : memref<32x32xf32, #tpu.memory_space<vmem>>, vector<32x32xf32>
    %7 = arith.truncf %6 : vector<32x32xf32> to vector<32x32xbf16>
    %cst = arith.constant dense<0.000000e+00> : vector<16x32xf32>
    %8 = tpu.matmul %5, %7, %cst {dimension_numbers = #tpu.dot_dimension_numbers<[1], [0], [0], [1], [0, 0, 1, 1], [], []>} : vector<16x32xbf16>, vector<32x32xbf16>, vector<16x32xf32> -> vector<16x32xf32>
    %9 = arith.addf %3, %8 : vector<16x32xf32>
    %c0_6 = arith.constant 0 : index
    %c0_7 = arith.constant 0 : index
    %10 = vector.load %arg7[%c0_6, %c0_7] : memref<16x32xf32, #tpu.memory_space<vmem>>, vector<16x32xf32>
    tpu.vector_store %arg7[%c0_6, %c0_7], %9 {strides = array<i32>} : memref<16x32xf32, #tpu.memory_space<vmem>>, vector<16x32xf32>,
    %c0_i32_8 = arith.constant 0 : i32
    %11 = arith.cmpi eq, %arg2, %c0_i32_8 : i32
    %12 = arith.extui %11 : i1 to i32
    %c0_i32_9 = arith.constant 0 : i32
    %13 = arith.cmpi ne, %12, %c0_i32_9 : i32
    scf.if %13 {
      %c0_10 = arith.constant 0 : index
      %c0_11 = arith.constant 0 : index
      %14 = vector.load %arg7[%c0_10, %c0_11] : memref<16x32xf32, #tpu.memory_space<vmem>>, vector<16x32xf32>
      %c0_12 = arith.constant 0 : index
      %c0_13 = arith.constant 0 : index
      %15 = vector.load %arg5[%c0_12, %c0_13] : memref<1x32xf32, #tpu.memory_space<vmem>>, vector<1x32xf32>
      %16 = vector.broadcast %15 : vector<1x32xf32> to vector<16x32xf32>
      %17 = arith.addf %14, %16 : vector<16x32xf32>
      %cst_14 = arith.constant 0.000000e+00 : f32
      %18 = vector.broadcast %cst_14 : f32 to vector<16x32xf32>
      %19 = arith.cmpf ogt, %17, %18 : vector<16x32xf32>
      %cst_15 = arith.constant 1.000000e+00 : f32
      %20 = vector.broadcast %cst_15 : f32 to vector<16x32xf32>
      %21 = arith.addf %17, %20 : vector<16x32xf32>
      %22 = math.exp %17 : vector<16x32xf32>
      %23 = arith.select %19, %21, %22 : vector<16x32xi1>, vector<16x32xf32>
      %c0_16 = arith.constant 0 : index
      %c0_17 = arith.constant 0 : index
      %24 = vector.load %arg6[%c0_16, %c0_17] : memref<16x32xf32, #tpu.memory_space<vmem>>, vector<16x32xf32>
      tpu.vector_store %arg6[%c0_16, %c0_17], %23 {strides = array<i32>} : memref<16x32xf32, #tpu.memory_space<vmem>>, vector<16x32xf32>,
    } else {
    }
    return
  }
  func.func @transform_0(%arg0: i32, %arg1: i32, %arg2: i32) -> (i32, i32) {
    %c0_i32 = arith.constant 0 : i32
    return %arg0, %arg2 : i32, i32
  }
  func.func @transform_1(%arg0: i32, %arg1: i32, %arg2: i32) -> (i32, i32) {
    %c0_i32 = arith.constant 0 : i32
    return %arg2, %arg1 : i32, i32
  }
  func.func @transform_2(%arg0: i32, %arg1: i32, %arg2: i32) -> (i32, i32) {
    %c0_i32 = arith.constant 0 : i32
    %c0_i32_0 = arith.constant 0 : i32
    return %c0_i32, %arg1 : i32, i32
  }
  func.func @transform_3(%arg0: i32, %arg1: i32, %arg2: i32) -> (i32, i32) {
    %c0_i32 = arith.constant 0 : i32
    return %arg0, %arg1 : i32, i32
  }
}

</mosaic_0001>

<bundles_post_ra>
// kernel: tpu_custom_call.1
= control target key start
LH: loop header
LB: loop body
LE: loop exit
PB: predicated region body
PF: predicated region fallthrough
CT: control target
= control target key end

     0   :  { %8 = vsyncpa [#allocation4], 0  ;;  %s333_s0 = inlined_call_operand.hbm [shape: f32[16,32], index: 0, kind: input, shape index: {}]   ;;  %s334_s1 = inlined_call_operand.hbm [shape: f32[32,32], index: 1, kind: input, shape index: {}]   ;;  %s335_s2 = inlined_call_operand.vmem [shape: f32[1,32], index: 2, kind: input, shape index: {}]   ;;  %s336_s3 = inlined_call_operand.hbm [shape: f32[16,32], index: 3, kind: output, shape index: {}]  }
   0x1   :  { %9 = vsyncpa [#allocation7], 0 }
   0x2   :  { %10 = vsyncpa [#allocation5], 0  ;;  %s251_s12 = smov [#allocation3]   ;;  %s179_s16 = scalar_lea.hbm %s333_s0, 256 }
   0x3   :  { %s16_s13 = sshll.u32 %s251_s12, 4  ;;  %p180_p0 = scmp.ne.s32.totalorder %s333_s0, %s179_s16  ;;  %s17_s13 = int_to_ptr.vmem [resolvable:$true] %s16_s13 }
   0x4   :  { %p183_p1 = scmp.lt.u32.totalorder %s179_s16, %s333_s0 }
   0x6   :  { %p185_p2 = pnand %p183_p1, %p180_p0 }
   0x8   :  { %188 = shalt.err (!%p185_p2)
}
   0x9   :  { %s189_s21 = scalar_lea.vmem %s17_s13, 256  ;;  %p194_p4 = scmp.lt.s32.totalorder %s17_s13, %s17_s13 }
   0xa   :  { %p190_p3 = scmp.ne.s32.totalorder %s17_s13, %s189_s21  ;;  %p195_p5 = scmp.lt.s32.totalorder %s189_s21, %s189_s21 }
   0xc   :  { %p196_p6 = por %p195_p5, %p194_p4 }
   0xe   :  { %p197_p7 = pnand %p196_p6, %p190_p3 }
  0x10   :  { %200 = shalt.err (!%p197_p7)
}
  0x11   :  { %s252_s22 = smov 128   ;;  %s253_s23 = smov 8  }
  0x12   :  { %22 = dma.hbm_to_vmem [thread:$0]  %s333_s0, 256, %s17_s13, [#allocation4], %s252_s22, %s252_s22, %s253_s23  }
  0x13   :  { %s254_s26 = smov [#allocation6]   ;;  %s201_s30 = scalar_lea.hbm %s334_s1, 512 }
  0x14   :  { %s28_s27 = sshll.u32 %s254_s26, 4  ;;  %p202_p8 = scmp.ne.s32.totalorder %s334_s1, %s201_s30  ;;  %s29_s27 = int_to_ptr.vmem [resolvable:$true] %s28_s27 }
  0x15   :  { %p205_p9 = scmp.lt.u32.totalorder %s201_s30, %s334_s1 }
  0x17   :  { %p207_p10 = pnand %p205_p9, %p202_p8 }
  0x19   :  { %210 = shalt.err (!%p207_p10)
}
  0x1a   :  { %s211_s8 = scalar_lea.vmem %s29_s27, 512  ;;  %p216_p12 = scmp.lt.s32.totalorder %s29_s27, %s29_s27 }
  0x1b   :  { %p212_p11 = scmp.ne.s32.totalorder %s29_s27, %s211_s8  ;;  %p217_p13 = scmp.lt.s32.totalorder %s211_s8, %s211_s8 }
  0x1d   :  { %p218_p0 = por %p217_p13, %p216_p12 }
  0x1f   :  { %p219_p1 = pnand %p218_p0, %p212_p11 }
  0x21   :  { %222 = shalt.err (!%p219_p1)
}
  0x22   :  { %34 = dma.hbm_to_vmem [thread:$0]  %s334_s1, 512, %s29_s27, [#allocation7], %s252_s22, %s252_s22, %s253_s23  }
  0x23   :  { %245 = dma.done.wait [#allocation4], 256  }
  0x24   :  { %246 = vsyncadd [#allocation4], 4294967040 }
  0x25   :  { %247 = dma.done.wait [#allocation7], 512  }
  0x26   :  { %248 = vsyncadd [#allocation7], 4294966784  ;;  %vm48_vm0 = vcmask 261120   ;;  %v255_v0 = vmov 0.0   ;;  %vm256_vm1 = vmmov 0   ;;  %v56_v1 = vld [vmem:[#allocation6] sm:$0xff] }
  0x27   :  { %160 = vmatprep.subr.bf16.mxu0 %v255_v0  ;;  %164 = vmatprep.mubr.msk.bf16.mxu0 %vm256_vm1, %v255_v0  ;;  %49 = vst.msk [vmem:[#allocation2] sm:$0xff] %vm48_vm0, %v255_v0  ;;  %50 = vst.msk [vmem:[#allocation2 + $0x8] sm:$0xff] %vm48_vm0, %v255_v0  ;;  %v57_v2 = vld [vmem:[#allocation6 + $0x8] sm:$0xff]  ;;  %v58_v3 = vld [vmem:[#allocation6 + $0x10] sm:$0xff]  ;;  %s257_s11 = smov [#allocation8]  }
  0x28   :  { %v60_v4 = vpack.c.bf16 %v57_v2, %v56_v1  ;;  %v59_v5 = vld [vmem:[#allocation6 + $0x18] sm:$0xff]  ;;  %v53_v7 = vld [vmem:[#allocation3] sm:$0xff]  ;;  %v156_v18 = vld [vmem:[%s335_s2] ss:$0 sm:$0xff]  ;;  %s142_s12 = sshll.u32 %s257_s11, 4  ;;  %s143_s12 = int_to_ptr.vmem [resolvable:$true] %s142_s12 }
  0x29   :  { %v61_v6 = vpack.c.bf16 %v59_v5, %v58_v3  ;;  %v54_v8 = vld [vmem:[#allocation3 + $0x8] sm:$0xff]  ;;  %s223_s2 = scalar_lea.vmem %s143_s12, 256  ;;  %p228_p3 = scmp.lt.s32.totalorder %s143_s12, %s143_s12 }
  0x2a   :  { %161 = vmatpush3.bf16.msra.mxu0 %v60_v4  ;;  %v55_v9 = vpack.c.bf16 %v54_v8, %v53_v7  ;;  %p224_p2 = scmp.ne.s32.totalorder %s143_s12, %s223_s2  ;;  %p229_p4 = scmp.lt.s32.totalorder %s223_s2, %s223_s2 }
  0x2b   :  { %162 = vmatprep.subr.bf16.mxu0 %v255_v0 }
  0x2c   :  { %p230_p5 = por %p229_p4, %p228_p3 }
  0x2e   :  { %163 = vmatpush3.bf16.msra.mxu0 %v61_v6  ;;  %v51_v10 = vld [vmem:[#allocation2] sm:$0xff]  ;;  %v52_v12 = vld [vmem:[#allocation2 + $0x8] sm:$0xff]  ;;  %p231_p6 = pnand %p230_p5, %p224_p2 }
  0x31   :  { %165 = vmatmul.mubr.msk.bf16.vlgmr.msra.gmra.mrb[0].mxu0 %vm48_vm0, %v55_v9 }
 0x104   :  { %v100_v11 = vpop.f32.mrb[0].mxu0 }
 0x105   :  { %v107_v13 = vadd.f32 %v100_v11, %v51_v10  ;;  %v166_v14 = vpop.f32.mrb[1].mxu0 }
 0x106   :  { %v103_v15 = vpop.f32.mrb[2].mxu0 }
 0x107   :  { %109 = vst.msk [vmem:[#allocation2] sm:$0xff] %vm48_vm0, %v107_v13  ;;  %v108_v16 = vadd.f32 %v103_v15, %v52_v12  ;;  %v167_v17 = vpop.f32.mrb[3].mxu0 }
 0x109   :  { %110 = vst.msk [vmem:[#allocation2 + $0x8] sm:$0xff] %vm48_vm0, %v108_v16 }
 0x10e   :  { %v114_v19 = vld [vmem:[#allocation2] sm:$0xff] }
 0x10f   :  { %v123_v20 = vadd.f32 %v156_v18, %v114_v19 }
 0x110   :  { %v115_v21 = vld [vmem:[#allocation2 + $0x8] sm:$0xff] }
 0x111   :  { %v124_v22 = vadd.f32 %v156_v18, %v115_v21  ;;  %v129_v23 = vmul.f32 1.442695, %v123_v20  ;;  %v127_v25 = vadd.f32 1.0, %v123_v20  ;;  %vm125_vm2 = vcmp.gt.f32.partialorder %v123_v20, 0.0 }
 0x113   :  { %175 = vpow2.f32 %v129_v23  ;;  %v131_v24 = vmul.f32 1.442695, %v124_v22  ;;  %v128_v27 = vadd.f32 1.0, %v124_v22  ;;  %vm126_vm3 = vcmp.gt.f32.partialorder %v124_v22, 0.0 }
 0x115   :  { %177 = vpow2.f32 %v131_v24 }
 0x11d   :  { %v176_v26 = vpop.eup %175 }
 0x11e   :  { %v133_v28 = vsel %vm125_vm2, %v127_v25, %v176_v26 }
 0x11f   :  { %v178_v29 = vpop.eup %177  ;;  %135 = vst.msk [vmem:[#allocation8] sm:$0xff] %vm48_vm0, %v133_v28 }
 0x120   :  { %v134_v30 = vsel %vm126_vm3, %v128_v27, %v178_v29 }
 0x121   :  { %136 = vst.msk [vmem:[#allocation8 + $0x8] sm:$0xff] %vm48_vm0, %v134_v30 }
 0x122   :  { %234 = shalt.err (!%p231_p6)
}
 0x123   :  { %s235_s15 = scalar_lea.hbm %s336_s3, 256 }
 0x124   :  { %p236_p7 = scmp.ne.s32.totalorder %s336_s3, %s235_s15  ;;  %p239_p8 = scmp.lt.u32.totalorder %s235_s15, %s336_s3 }
 0x126   :  { %p241_p9 = pnand %p239_p8, %p236_p7 }
 0x128   :  { %244 = shalt.err (!%p241_p9)
}
 0x129   :  { %148 = dma.vmem_to_hbm [thread:$0]  %s143_s12, 256, %s336_s3, [#allocation5], %s252_s22, %s252_s22, %s253_s23  }
 0x12a   :  { %249 = dma.done.wait [#allocation5], 256  }
 0x12b   :  { %250 = vsyncadd [#allocation5], 4294967040 }
 0x12c   :  { %152 = vsyncpa [#allocation4], 1 }
 0x12d   :  { %153 = vsyncpa [#allocation7], 1 }
 0x12e   :  { %154 = vsyncpa [#allocation5], 1 }

</bundles_post_ra>
